<compile_context>
chip_gen: v5e
topology: v5e:2x2
jax: 0.10.0
libtpu: 0.0.40
codegen_flags: <defaults>
</compile_context>

<pallas_src>
import jax
import jax.numpy as jnp
from jax import lax
from jax.experimental import pallas as pl
from jax.experimental.pallas import tpu as pltpu

LN_EPS = 1e-5  # nn.LayerNorm default


def pooler_kernel(x_ref, w_ref, b_ref, o_ref):
    # x_ref: (TB, D_in)      current batch tile (pipelined)
    # w_ref: (D_in, D_out)   pre-transposed, gamma-folded weight (resident)
    # b_ref: (1, D_out)      beta-folded bias (resident)
    x = x_ref[...].astype(jnp.float32)

    # LayerNorm statistics in f32 (biased variance, matching nn.LayerNorm).
    mean = jnp.mean(x, axis=-1, keepdims=True)
    centered = x - mean
    var = jnp.mean(centered * centered, axis=-1, keepdims=True)
    normed = centered * lax.rsqrt(var + LN_EPS)            # (TB, D_in), f32

    # Feed the MXU in the weight's native dtype (bf16 stays bf16), f32 acc.
    normed = normed.astype(w_ref.dtype)
    y = jnp.dot(normed, w_ref[...], preferred_element_type=jnp.float32)
    y = y + b_ref[...].astype(jnp.float32)
    o_ref[...] = y.astype(o_ref.dtype)


def fold_layernorm_into_linear(gamma, beta, weight, bias):
    """One-time (init / param-load) fold of LN's affine into the Linear.

    dense(LN(x)) = ((x-mu)*inv_std*gamma + beta) @ W.T + b
                 = ((x-mu)*inv_std) @ (W*gamma).T + (W @ beta + b)

    Returns the weight pre-transposed to (D_in, D_out) so the forward-path
    kernel never transposes (MXU-natural layout), plus a (1, D_out) bias.
    """
    w_folded = (weight * gamma[None, :]).T                # (D_in, D_out)
    b_folded = (weight @ beta + bias).reshape(1, -1)      # (1, D_out)
    return w_folded, b_folded


def _pick_batch_tile(B, max_tile=512):
    if B <= max_tile:
        return B          # one full-height block (always a legal block shape)
    return max_tile       # multiple of 8; ragged tail handled by cdiv grid


def pooler_forward(x, w_folded, b_folded, *, batch_tile=None):
    """x: (B, D_in); w_folded: (D_in, D_out); b_folded: (1, D_out)."""
    B, D_in = x.shape
    D_out = w_folded.shape[1]
    tb = batch_tile if batch_tile is not None else _pick_batch_tile(B)
    grid = (pl.cdiv(B, tb),)

    itemsize = jnp.dtype(x.dtype).itemsize
    cost = pl.CostEstimate(
        flops=2 * B * D_in * D_out,
        transcendentals=0,
        bytes_accessed=(x.size * itemsize
                        + w_folded.size * jnp.dtype(w_folded.dtype).itemsize
                        + b_folded.size * jnp.dtype(b_folded.dtype).itemsize
                        + B * D_out * itemsize),
    )

    return pl.pallas_call(
        pooler_kernel,
        out_shape=jax.ShapeDtypeStruct((B, D_out), x.dtype),
        grid_spec=pltpu.PrefetchScalarGridSpec(
            num_scalar_prefetch=0,
            grid=grid,
            in_specs=[
                pl.BlockSpec((tb, D_in), lambda i: (i, 0)),      # pipelined x
                pl.BlockSpec((D_in, D_out), lambda i: (0, 0)),   # resident W
                pl.BlockSpec((1, D_out), lambda i: (0, 0)),      # resident b
            ],
            out_specs=pl.BlockSpec((tb, D_out), lambda i: (i, 0)),
        ),
        compiler_params=pltpu.CompilerParams(
            dimension_semantics=("parallel",),
            vmem_limit_bytes=48 * 1024 * 1024,
        ),
        cost_estimate=cost,
    )(x, w_folded, b_folded)


def reference_forward(x, gamma, beta, weight, bias):
    """Pure-JAX reference matching the PyTorch module exactly."""
    mean = jnp.mean(x, axis=-1, keepdims=True)
    var = jnp.mean((x - mean) ** 2, axis=-1, keepdims=True)
    normed = (x - mean) / jnp.sqrt(var + LN_EPS) * gamma + beta
    return normed @ weight.T + bias


if __name__ == "__main__":
    key = jax.random.PRNGKey(0)
    B, D_in, D_out = 16, 32, 16

    k_x, k_g, k_be, k_w, k_b = jax.random.split(key, 5)
    x = jax.random.normal(k_x, (B, D_in), dtype=jnp.float32)

    # Non-trivial LN affine so the gamma/beta fold is actually exercised.
    gamma = 1.0 + 0.1 * jax.random.normal(k_g, (D_in,), dtype=jnp.float32)
    beta = 0.1 * jax.random.normal(k_be, (D_in,), dtype=jnp.float32)
    bound = 1.0 / (D_in ** 0.5)
    weight = jax.random.uniform(k_w, (D_out, D_in), jnp.float32, -bound, bound)
    bias = jax.random.uniform(k_b, (D_out,), jnp.float32, -bound, bound)

    # Init-time parameter prep (fold + transpose; not part of the per-call
    # forward path).
    w_folded, b_folded = fold_layernorm_into_linear(gamma, beta, weight, bias)

    # batch_tile=8 -> grid=(2,) at this tiny shape, exercising the pipeline.
    out = pooler_forward(x, w_folded, b_folded, batch_tile=8)
    out = jax.block_until_ready(out)

    ref = reference_forward(x, gamma, beta, weight, bias)
    assert out.shape == (B, D_out)
    max_err = jnp.max(jnp.abs(out - ref))
    assert jnp.allclose(out, ref, atol=2e-5, rtol=1e-5), f"max abs err {max_err}"

    print("KERNEL_OK")
</pallas_src>

<mosaic_0001>
module attributes {stable_mosaic.version = 11 : i64} {
  func.func @pooler_kernel(%arg0: i32, %arg1: memref<8x32xf32, #tpu.memory_space<vmem>>, %arg2: memref<32x16xf32, #tpu.memory_space<vmem>>, %arg3: memref<1x16xf32, #tpu.memory_space<vmem>>, %arg4: memref<8x16xf32, #tpu.memory_space<vmem>>) attributes {dimension_semantics = [#tpu.dimension_semantics<parallel>], iteration_bounds = array<i64: 2>, scalar_prefetch = 0 : i64, scratch_operands = 0 : i64, tpu.core_type = #tpu.core_type<tc>, window_params = [{transform_indices = @transform_0, window_bounds = array<i64: 8, 32>}, {pipeline_mode = #tpu.pipeline_mode<synchronous>, transform_indices = @transform_1, window_bounds = array<i64: 32, 16>}, {pipeline_mode = #tpu.pipeline_mode<synchronous>, transform_indices = @transform_2, window_bounds = array<i64: 1, 16>}, {transform_indices = @transform_3, window_bounds = array<i64: 8, 16>}]} {
    %c0 = arith.constant 0 : index
    %c0_0 = arith.constant 0 : index
    %0 = vector.load %arg1[%c0, %c0_0] : memref<8x32xf32, #tpu.memory_space<vmem>>, vector<8x32xf32>
    %cst = arith.constant dense<0.000000e+00> : vector<8xf32>
    %1 = vector.multi_reduction <add>, %0, %cst [1] : vector<8x32xf32> to vector<8xf32>
    %2 = vector.shape_cast %1 : vector<8xf32> to vector<8x1xf32>
    %cst_1 = arith.constant 3.200000e+01 : f32
    %3 = vector.broadcast %cst_1 : f32 to vector<8x1xf32>
    %4 = arith.divf %2, %3 : vector<8x1xf32>
    %5 = vector.broadcast %4 : vector<8x1xf32> to vector<8x32xf32>
    %6 = arith.subf %0, %5 : vector<8x32xf32>
    %7 = arith.mulf %6, %6 : vector<8x32xf32>
    %cst_2 = arith.constant dense<0.000000e+00> : vector<8xf32>
    %8 = vector.multi_reduction <add>, %7, %cst_2 [1] : vector<8x32xf32> to vector<8xf32>
    %9 = vector.shape_cast %8 : vector<8xf32> to vector<8x1xf32>
    %cst_3 = arith.constant 3.200000e+01 : f32
    %10 = vector.broadcast %cst_3 : f32 to vector<8x1xf32>
    %11 = arith.divf %9, %10 : vector<8x1xf32>
    %cst_4 = arith.constant 9.99999974E-6 : f32
    %12 = vector.broadcast %cst_4 : f32 to vector<8x1xf32>
    %13 = arith.addf %11, %12 : vector<8x1xf32>
    %14 = math.rsqrt %13 : vector<8x1xf32>
    %15 = vector.broadcast %14 : vector<8x1xf32> to vector<8x32xf32>
    %16 = arith.mulf %6, %15 : vector<8x32xf32>
    %c0_5 = arith.constant 0 : index
    %c0_6 = arith.constant 0 : index
    %17 = vector.load %arg2[%c0_5, %c0_6] : memref<32x16xf32, #tpu.memory_space<vmem>>, vector<32x16xf32>
    %cst_7 = arith.constant dense<0.000000e+00> : vector<8x16xf32>
    %18 = tpu.matmul %16, %17, %cst_7 {dimension_numbers = #tpu.dot_dimension_numbers<[1], [0], [0], [1], [0, 0, 1, 1], [], []>} : vector<8x32xf32>, vector<32x16xf32>, vector<8x16xf32> -> vector<8x16xf32>
    %c0_8 = arith.constant 0 : index
    %c0_9 = arith.constant 0 : index
    %19 = vector.load %arg3[%c0_8, %c0_9] : memref<1x16xf32, #tpu.memory_space<vmem>>, vector<1x16xf32>
    %20 = vector.broadcast %19 : vector<1x16xf32> to vector<8x16xf32>
    %21 = arith.addf %18, %20 : vector<8x16xf32>
    %c0_10 = arith.constant 0 : index
    %c0_11 = arith.constant 0 : index
    %22 = vector.load %arg4[%c0_10, %c0_11] : memref<8x16xf32, #tpu.memory_space<vmem>>, vector<8x16xf32>
    tpu.vector_store %arg4[%c0_10, %c0_11], %21 {strides = array<i32>} : memref<8x16xf32, #tpu.memory_space<vmem>>, vector<8x16xf32>,
    return
  }
  func.func @transform_0(%arg0: i32) -> (i32, i32) {
    %c0_i32 = arith.constant 0 : i32
    %c0_i32_0 = arith.constant 0 : i32
    return %arg0, %c0_i32 : i32, i32
  }
  func.func @transform_1(%arg0: i32) -> (i32, i32) {
    %c0_i32 = arith.constant 0 : i32
    %c0_i32_0 = arith.constant 0 : i32
    %c0_i32_1 = arith.constant 0 : i32
    return %c0_i32, %c0_i32_0 : i32, i32
  }
  func.func @transform_2(%arg0: i32) -> (i32, i32) {
    %c0_i32 = arith.constant 0 : i32
    %c0_i32_0 = arith.constant 0 : i32
    %c0_i32_1 = arith.constant 0 : i32
    return %c0_i32, %c0_i32_0 : i32, i32
  }
  func.func @transform_3(%arg0: i32) -> (i32, i32) {
    %c0_i32 = arith.constant 0 : i32
    %c0_i32_0 = arith.constant 0 : i32
    return %arg0, %c0_i32 : i32, i32
  }
}

</mosaic_0001>

<bundles_post_ra>
// kernel: tpu_custom_call.1
= control target key start
LH: loop header
LB: loop body
LE: loop exit
PB: predicated region body
PF: predicated region fallthrough
CT: control target
= control target key end

     0   :  { %8 = vsyncpa [#allocation3], 0  ;;  %s549_s0 = inlined_call_operand.vmem [shape: f32[16,32], index: 0, kind: input, shape index: {}]   ;;  %s550_s1 = inlined_call_operand.vmem [shape: f32[32,16], index: 1, kind: input, shape index: {}]   ;;  %s551_s2 = inlined_call_operand.vmem [shape: f32[1,16], index: 2, kind: input, shape index: {}]   ;;  %s552_s3 = inlined_call_operand.hbm [shape: f32[16,16], index: 3, kind: output, shape index: {}]  }
   0x1   :  { %10 = vsyncpa [#allocation3 + $0x1], 0  ;;  %s446_s12 = smov 0   ;;  %s448_s13 = smov 0  }
   0x2   :  { %s450_s14 = smov 0   ;;  %s452_s15 = smov 0  }
   0x3 LB: > { %s467_s16 = sadd.s32 4294967295, %s423_s15   ;;  %s305_s17 = sadd.s32 4294967294, %s423_s15   ;;  %s423_s15 = sphi %s452_s15, %s558_s15   ;;  %s419_s14 = sphi %s450_s14, %s557_s14   ;;  %s415_s13 = sphi %s448_s13, %s556_s13   ;;  %s411_s12 = sphi %s446_s12, %s555_s12  }
   0x4   : > { %s471_s18 = sadd.s32 1, %s423_s15   ;;  %s91_s19 = sadd.s32 1, %s419_s14 }
   0x5   : > { %s88_s20 = ssub.s32 %s423_s15, %s471_s18  ;;  %p101_p0 = scmp.ne.s32.totalorder %s419_s14, %s415_s13 }
   0x6   : > { %p89_p1 = scmp.eq.s32.totalorder %s88_s20, 0  ;;  %p102_p2 = scmp.eq.s32.totalorder %s467_s16, 1 }
   0x7   : > { %p107_p3 = scmp.ne.s32.totalorder %s415_s13, %s411_s12  ;;  %p108_p4 = scmp.eq.s32.totalorder %s305_s17, 1 }
   0x8   : > { %s482_s21 = scalar_select %p89_p1, %s419_s14, %s91_s19  }
   0x9   : > { %p484_p5 = por %p102_p2, %p101_p0  ;;  %p488_p6 = por %p108_p4, %p107_p3 }
   0xa   : > { %p308_p7 = scmp.ge.s32.totalorder %s423_s15, 1  ;;  %p139_p8 = scmp.lt.s32.totalorder %s423_s15, 3 }
   0xc   : > { %p140_p9 = pnand %p308_p7, %p139_p8 }
   0xd   : > { %p162_p10 = scmp.lt.s32.totalorder (!%p140_p9), %s467_s16, 1  ;;  %s159_s10 = sand.u32 (!%p140_p9), 1, %s415_s13  }
   0xe   : > { %143 = sbr.rel (%p140_p9) target bundleno = 419 (0x1a3), region = 32  ;;  %s309_s11 = sshll.u32 (!%p140_p9), %s159_s10, 3 }
   0xf   : > { %s313_s17 = sshll.u32 (!%p140_p9), %s467_s16, 3  ;;  %s161_s27 = scalar_lea.vmem (!%p140_p9), [#allocation2], %s309_s11 }
  0x10   : > { %s231_s30 = scalar_lea.sflag (!%p140_p9), [#allocation3], %s159_s10  ;;  %s381_s7 = scalar_lea.hbm (!%p140_p9), %s552_s3, 16 }
  0x13   : > { %s163_s24 = scalar_select %p162_p10, %s467_s16, 1  ;;  %vm167_vm0 = vcmask 261120   ;;  %v425_v2 = vmov 32.0   ;;  %v200_v14 = vld [vmem:[%s550_s1 + $0x18] sm:$0xff]  ;;  %v199_v15 = vld [vmem:[%s550_s1 + $0x10] sm:$0xff]  ;;  %v198_v16 = vld [vmem:[%s550_s1 + $0x8] sm:$0xff] }
  0x14   : > { %357 = vrcp.f32 %v425_v2  ;;  %220 = vmatpush.msra.mxu0 %v200_v14  ;;  %v197_v17 = vld [vmem:[%s550_s1] sm:$0xff]  ;;  %vm228_vm5 = vcmask 130048  }
  0x15   : > { %s310_s25 = sshll.u32 %s163_s24, 3  ;;  %s241_s24 = scalar_lea.hbm %s552_s3, %s313_s17  ;;  %v356_v29 = vld [vmem:[%s551_s2] ss:$0 sm:$0xff] }
  0x16   : > { %s165_s28 = scalar_lea.vmem %s549_s0, %s310_s25  ;;  %221 = vmatpush.msra.mxu0 %v199_v15  ;;  %s245_s29 = sshll.u32 %s241_s24, 4  ;;  %s246_s29 = int_to_ptr.hbm [resolvable:$true] %s245_s29 }
  0x17   : > { %v166_v0 = vld [vmem:[%s165_s28] sm:$0xff]  ;;  %s243_s28 = sshll.u32 %s161_s27, 4  ;;  %s375_s16 = sshra.s32 %s246_s29, 4  ;;  %s244_s28 = int_to_ptr.vmem [resolvable:$true] %s243_s28  ;;  %s376_s16 = int_to_ptr.hbm [resolvable:$true] %s375_s16 }
  0x18   : > { %v168_v1 = vsel %vm167_vm0, %v166_v0, 0.0  ;;  %222 = vmatpush.msra.mxu0 %v198_v16  ;;  %s377_s4 = scalar_lea.hbm %s376_s16, 8  ;;  %p382_p0 = scmp.lt.s32.totalorder %s376_s16, %s552_s3 }
  0x19   : > { %169 = vadd.xlane.f32.xlu0 %v168_v1  ;;  %p378_p11 = scmp.ne.s32.totalorder %s376_s16, %s377_s4  ;;  %p383_p1 = scmp.lt.s32.totalorder %s381_s7, %s377_s4 }
  0x1a   : > { %v358_v3 = vpop.eup %357  ;;  %223 = vmatpush.msra.mxu0 %v197_v17 }
  0x1b   : > { %v172_v4 = vmul.f32 32.0, %v358_v3  ;;  %vm176_vm1 = vweird.f32 %v358_v3  ;;  %p379_p12 = pnand %p378_p11, %p484_p5  ;;  %p384_p2 = por %p383_p1, %p382_p0 }
  0x1d   : > { %v173_v5 = vsub.f32 1.0, %v172_v4  ;;  %p380_p13 = pneg %p379_p12 }
  0x1f   : > { %v174_v6 = vmul.f32 %v358_v3, %v173_v5  ;;  %p385_p3 = pnand %p384_p2, %p380_p13 }
  0x21   : > { %v175_v7 = vadd.f32 %v358_v3, %v174_v6 }
  0x23   : > { %v177_v8 = vsel %vm176_vm1, %v358_v3, %v175_v7 }
  0x8c   : > { %v170_v9 = vpop.xlane.xlu0 %169 }
  0x8d   : > { %v178_v10 = vmul.f32 %v177_v8, %v170_v9 }
  0x8f   : > { %v179_v11 = vsub.f32 %v166_v0, %v178_v10 }
  0x91   : > { %v180_v12 = vmul.f32 %v179_v11, %v179_v11 }
  0x93   : > { %v181_v13 = vsel %vm167_vm0, %v180_v12, 0.0 }
  0x94   : > { %182 = vadd.xlane.f32.xlu0 %v181_v13 }
 0x107   : > { %v183_v18 = vpop.xlane.xlu0 %182 }
 0x108   : > { %v184_v19 = vmul.f32 %v183_v18, %v177_v8 }
 0x10a   : > { %v185_v20 = vadd.f32 1e-05, %v184_v19 }
 0x10c   : > { %359 = vrsqrt.f32 %v185_v20  ;;  %vm192_vm3 = vweird.f32 %v185_v20 }
 0x112   : > { %v360_v21 = vpop.eup %359 }
 0x113   : > { %v187_v22 = vmul.f32 %v360_v21, %v185_v20  ;;  %vm193_vm2 = vweird.f32 %v360_v21 }
 0x114   : > { %vm194_vm4 = vmor %vm192_vm3, %vm193_vm2 }
 0x115   : > { %v188_v23 = vmul.f32 %v360_v21, %v187_v22 }
 0x117   : > { %v189_v24 = vmul.f32 0.5, %v188_v23 }
 0x119   : > { %v190_v25 = vsub.f32 1.5, %v189_v24 }
 0x11b   : > { %v191_v26 = vmul.f32 %v360_v21, %v190_v25 }
 0x11d   : > { %v195_v27 = vsel %vm194_vm4, %v360_v21, %v191_v26 }
 0x11e   : > { %v196_v28 = vmul.f32 %v195_v27, %v179_v11 }
 0x120   : > { %311 = vmatmul.msk.f32.vlgmr.msra.gmra.mxu0 %vm167_vm0, %v196_v28 }
 0x19d   : > { %v225_v30 = vpop.f32.mrf.mxu0 }
 0x19e   : > { %v226_v31 = vadd.f32 %v356_v29, %v225_v30 }
 0x1a0   : > { %229 = vst.msk [vmem:[%s161_s27] sm:$0xff] %vm228_vm5, %v226_v31 }
 0x1a1   : > { %388 = shalt.err (!%p385_p3)
}
 0x1a2   : > { %316 = dma.vmem_to_hbm [thread:$0]  (%p484_p5), %s244_s28, 128, %s246_s29, %s231_s30  }
 0x1a3 PF: > { %p322_p4 = scmp.ge.s32.totalorder %s423_s15, 2  ;;  %s257_s10 = sand.u32 1, %s411_s12  }
 0x1a4   : > { %s258_s11 = scalar_lea.sflag [#allocation3], %s257_s10 }
 0x1a5   : > { %p319_p7 = pnand %p322_p4, %p488_p6 }
 0x1a7   : > { %p320_p8 = pneg %p319_p7 }
 0x1a9   : > { %406 = dma.done.wait (%p320_p8), %s258_s11, 128  }
 0x1aa   : > { %408 = vsyncadd (%p320_p8), %s258_s11, 4294967168  ;;  %p13_p9 = scmp.ge.s32.totalorder %s471_s18, 4   ;;  %s555_s12 = smov %s415_s13 }
 0x1ab   : > { %s556_s13 = smov %s419_s14  ;;  %s557_s14 = smov %s482_s21 }
 0x1ac   : > { %s558_s15 = smov %s471_s18  ;;  %15 = sbr.rel (!%p13_p9) target bundleno = 3 (0x3), region = 67 }
 0x1b1   :  { %264 = vsyncpa [#allocation3], 1 }
 0x1b2   :  { %266 = vsyncpa [#allocation3 + $0x1], 1 }

</bundles_post_ra>
